<compile_context>
chip_gen: v7x
topology: tpu7x:2x2x1
jax: 0.10.0
libtpu: 0.0.40
codegen_flags: <defaults>
</compile_context>

<pallas_src>
import functools

import jax
import jax.numpy as jnp
from jax.experimental import pallas as pl
from jax.experimental.pallas import tpu as pltpu


def _round_up(n: int, m: int) -> int:
    return ((n + m - 1) // m) * m


def _build_t(x_f32, degree: int, mm_dtype, k_pad_cols: int):
    """T = [T_0 | T_1 | ... | T_D | zero-pad] in the matmul dtype.

    Recurrence runs in f32 (only the last two f32 polys stay live); each slab
    is cast to mm_dtype as soon as it is produced so no full f32 concatenate
    is ever materialized.
    """
    slabs = [jnp.ones_like(x_f32).astype(mm_dtype)]
    if degree >= 1:
        t_prev = jnp.ones_like(x_f32)
        t_curr = x_f32
        slabs.append(t_curr.astype(mm_dtype))
        for _ in range(2, degree + 1):
            t_next = 2.0 * x_f32 * t_curr - t_prev
            slabs.append(t_next.astype(mm_dtype))
            t_prev, t_curr = t_curr, t_next
    if k_pad_cols > 0:
        slabs.append(jnp.zeros((x_f32.shape[0], k_pad_cols), mm_dtype))
    return jnp.concatenate(slabs, axis=-1)


def _cheby_kernel_resident(x_ref, w_ref, o_ref, *, degree: int, k_pad_cols: int):
    # 1-D grid over batch; the whole (padded) weight stays resident.
    x = jnp.tanh(x_ref[...].astype(jnp.float32))
    t = _build_t(x, degree, w_ref.dtype, k_pad_cols)
    o_ref[...] = jnp.dot(
        t, w_ref[...], preferred_element_type=jnp.float32).astype(o_ref.dtype)


def _cheby_kernel_tiled(x_ref, w_ref, o_ref, t_ref, *, degree: int, k_pad_cols: int):
    # 2-D grid (batch parallel, output arbitrary); T is built once per batch
    # tile into VMEM scratch and reused for every output tile.
    @pl.when(pl.program_id(1) == 0)
    def _():
        x = jnp.tanh(x_ref[...].astype(jnp.float32))
        t_ref[...] = _build_t(x, degree, t_ref.dtype, k_pad_cols)

    o_ref[...] = jnp.dot(
        t_ref[...], w_ref[...], preferred_element_type=jnp.float32).astype(o_ref.dtype)


def chebyshev_forward(x, cheby_coeffs, *, degree: int,
                      tile_b: int = 512, tile_n: int = 256,
                      use_bf16: bool = True,
                      max_resident_weight_bytes: int = 8 * 1024 * 1024):
    """x: (a, b, input_dim).  cheby_coeffs: (input_dim, output_dim, degree+1).

    Note: with use_bf16=True the matmul operands are bf16 (f32 accumulation);
    use_bf16=False is the bit-tight f32 path.
    """
    a, b, c = x.shape
    input_dim, output_dim, dp1 = cheby_coeffs.shape
    assert dp1 == degree + 1
    assert c == input_dim, "last axis of x must equal input_dim"

    B = a * b
    x2 = x.reshape(B, input_dim)  # keep native dtype; upcast in-kernel
    x_bytes = jnp.dtype(x2.dtype).itemsize

    mm_dtype = jnp.bfloat16 if use_bf16 else jnp.float32
    mm_bytes = 2 if use_bf16 else 4

    # Fused weights: (I, O, D+1) -> (D+1, I, O) -> ((D+1)*I, O), zero-padded
    # so that K and O are multiples of 128 (lane-dense stores, clean MXU feed).
    kdim = (degree + 1) * input_dim
    kdim_pad = _round_up(kdim, 128)
    o_pad = _round_up(output_dim, 128)
    k_pad_cols = kdim_pad - kdim
    w = jnp.transpose(cheby_coeffs, (2, 0, 1)).reshape(kdim, output_dim)
    w = w.astype(mm_dtype)
    w = jnp.pad(w, ((0, kdim_pad - kdim), (0, o_pad - output_dim)))
    w_bytes = kdim_pad * o_pad * mm_bytes

    # Per-generation VMEM budget (~0.75x physical; honors 64 MiB-per-TC chips).
    try:
        info = pltpu.get_tpu_info()
        vmem_cap = int(getattr(info, "vmem_capacity_bytes", 128 * 1024 * 1024))
    except Exception:  # e.g. interpret mode / no TPU info available
        vmem_cap = 128 * 1024 * 1024
    vmem_budget = int(0.75 * vmem_cap)

    # Output (lane) tile for the tiled fallback path: divides o_pad exactly.
    tn = tile_n if (tile_n % 128 == 0 and o_pad % tile_n == 0) else 128

    def resident_est(tb):
        return (2 * tb * input_dim * x_bytes      # x, double-buffered
                + 2 * tb * o_pad * 4              # out, double-buffered
                + 2 * w_bytes                     # weight buffers
                + tb * kdim_pad * mm_bytes        # in-kernel T
                + 2 * tb * input_dim * 4)         # two live f32 polys

    def tiled_est(tb):
        return (2 * tb * input_dim * x_bytes
                + 2 * tb * tn * 4
                + 2 * kdim_pad * tn * mm_bytes
                + tb * kdim_pad * mm_bytes        # T scratch
                + 2 * tb * input_dim * 4)

    # Batch tile: multiple of 16 (keeps bf16 T sublane-packed), capped at the
    # (rounded-up) batch, shrunk if the VMEM estimate exceeds the budget.
    tb = min(tile_b, _round_up(B, 16))
    tb = max(16, _round_up(tb, 16))

    use_resident = w_bytes <= max_resident_weight_bytes
    est_fn = resident_est if use_resident else tiled_est
    while tb > 16 and est_fn(tb) > vmem_budget:
        tb = max(16, _round_up(tb // 2, 16))
    if use_resident and resident_est(tb) > vmem_budget:
        use_resident = False
        est_fn = tiled_est
        while tb > 16 and est_fn(tb) > vmem_budget:
            tb = max(16, _round_up(tb // 2, 16))

    B_pad = _round_up(B, tb)
    if B_pad != B:
        x2 = jnp.pad(x2, ((0, B_pad - B), (0, 0)))

    est = est_fn(tb)
    vmem_limit = int(min(max(2 * est, 32 * 1024 * 1024), vmem_budget))

    if use_resident:
        kernel = functools.partial(
            _cheby_kernel_resident, degree=degree, k_pad_cols=k_pad_cols)
        y = pl.pallas_call(
            kernel,
            out_shape=jax.ShapeDtypeStruct((B_pad, o_pad), jnp.float32),
            grid_spec=pltpu.PrefetchScalarGridSpec(
                num_scalar_prefetch=0,
                grid=(B_pad // tb,),
                in_specs=[
                    pl.BlockSpec((tb, input_dim), lambda i: (i, 0)),
                    # Constant block index -> weight DMA'd once, stays resident.
                    pl.BlockSpec((kdim_pad, o_pad), lambda i: (0, 0)),
                ],
                out_specs=pl.BlockSpec((tb, o_pad), lambda i: (i, 0)),
            ),
            compiler_params=pltpu.CompilerParams(
                dimension_semantics=("parallel",),
                vmem_limit_bytes=vmem_limit,
            ),
        )(x2, w)
    else:
        kernel = functools.partial(
            _cheby_kernel_tiled, degree=degree, k_pad_cols=k_pad_cols)
        y = pl.pallas_call(
            kernel,
            out_shape=jax.ShapeDtypeStruct((B_pad, o_pad), jnp.float32),
            grid_spec=pltpu.PrefetchScalarGridSpec(
                num_scalar_prefetch=0,
                grid=(B_pad // tb, o_pad // tn),
                in_specs=[
                    pl.BlockSpec((tb, input_dim), lambda i, j: (i, 0)),
                    pl.BlockSpec((kdim_pad, tn), lambda i, j: (0, j)),
                ],
                out_specs=pl.BlockSpec((tb, tn), lambda i, j: (i, j)),
                scratch_shapes=[pltpu.VMEM((tb, kdim_pad), mm_dtype)],
            ),
            compiler_params=pltpu.CompilerParams(
                # Output axis carries the T scratch -> must be "arbitrary".
                dimension_semantics=("parallel", "arbitrary"),
                vmem_limit_bytes=vmem_limit,
            ),
        )(x2, w)

    y = y[:B, :output_dim]
    return y.reshape(a, b, output_dim)


def chebyshev_reference(x, cheby_coeffs, *, degree: int):
    """Pure-JAX reference mirroring the PyTorch forward (f32 throughout)."""
    a, b, c = x.shape
    input_dim = cheby_coeffs.shape[0]
    xf = jnp.tanh(x.reshape(-1, input_dim).astype(jnp.float32))
    polys = [jnp.ones_like(xf)]
    if degree > 0:
        polys.append(xf)
    for _ in range(2, degree + 1):
        polys.append(2.0 * xf * polys[-1] - polys[-2])
    cheby = jnp.stack(polys, axis=-1)  # (B, I, D+1)
    y = jnp.einsum("bid,iod->bo", cheby, cheby_coeffs.astype(jnp.float32))
    return y.reshape(a, b, -1)


if __name__ == "__main__":
    # Small shapes consistent with the module: x is (a, b, input_dim).
    a, b = 2, 8
    input_dim, output_dim, degree = 32, 16, 4

    key = jax.random.PRNGKey(0)
    kx, kw = jax.random.split(key)

    x = jax.random.normal(kx, (a, b, input_dim), dtype=jnp.float32)

    # Deterministic init matching nn.init.normal_(mean=0, std=1/(I*(D+1))).
    std = 1.0 / (input_dim * (degree + 1))
    cheby_coeffs = std * jax.random.normal(
        kw, (input_dim, output_dim, degree + 1), dtype=jnp.float32)

    y_ref = chebyshev_reference(x, cheby_coeffs, degree=degree)

    # Default path: resident weight, bf16 operands, f32 accumulation.
    y = chebyshev_forward(x, cheby_coeffs, degree=degree)
    y = jax.block_until_ready(y)
    assert y.shape == (a, b, output_dim)
    assert jnp.allclose(y, y_ref, atol=5e-3, rtol=2e-2)

    # Exact f32 path (bit-tight tolerance).
    y32 = chebyshev_forward(x, cheby_coeffs, degree=degree, use_bf16=False)
    y32 = jax.block_until_ready(y32)
    assert jnp.allclose(y32, y_ref, atol=1e-5, rtol=1e-5)

    # Exercise the tiled fallback (T cached in VMEM scratch across output tiles).
    y_tiled = chebyshev_forward(x, cheby_coeffs, degree=degree,
                                max_resident_weight_bytes=0)
    y_tiled = jax.block_until_ready(y_tiled)
    assert jnp.allclose(y_tiled, y_ref, atol=5e-3, rtol=2e-2)

    print("KERNEL_OK")
</pallas_src>

<mosaic_0001>
module attributes {stable_mosaic.version = 11 : i64} {
  func.func @_cheby_kernel_resident(%arg0: i32, %arg1: memref<16x32xf32, #tpu.memory_space<vmem>>, %arg2: memref<256x128xbf16, #tpu.memory_space<vmem>>, %arg3: memref<16x128xf32, #tpu.memory_space<vmem>>) attributes {dimension_semantics = [#tpu.dimension_semantics<parallel>], iteration_bounds = array<i64: 1>, scalar_prefetch = 0 : i64, scratch_operands = 0 : i64, tpu.core_type = #tpu.core_type<tc>, window_params = [{transform_indices = @transform_0, window_bounds = array<i64: 16, 32>}, {pipeline_mode = #tpu.pipeline_mode<synchronous>, transform_indices = @transform_1, window_bounds = array<i64: 256, 128>}, {transform_indices = @transform_2, window_bounds = array<i64: 16, 128>}]} {
    %c0 = arith.constant 0 : index
    %c0_0 = arith.constant 0 : index
    %0 = vector.load %arg1[%c0, %c0_0] : memref<16x32xf32, #tpu.memory_space<vmem>>, vector<16x32xf32>
    %1 = math.tanh %0 : vector<16x32xf32>
    %cst = arith.constant 1.000000e+00 : f32
    %2 = vector.broadcast %cst : f32 to vector<16x32xf32>
    %3 = arith.truncf %2 : vector<16x32xf32> to vector<16x32xbf16>
    %cst_1 = arith.constant 1.000000e+00 : f32
    %4 = vector.broadcast %cst_1 : f32 to vector<16x32xf32>
    %5 = arith.truncf %1 : vector<16x32xf32> to vector<16x32xbf16>
    %cst_2 = arith.constant 2.000000e+00 : f32
    %6 = vector.broadcast %cst_2 : f32 to vector<16x32xf32>
    %7 = arith.mulf %6, %1 : vector<16x32xf32>
    %8 = arith.mulf %7, %1 : vector<16x32xf32>
    %9 = arith.subf %8, %4 : vector<16x32xf32>
    %10 = arith.truncf %9 : vector<16x32xf32> to vector<16x32xbf16>
    %cst_3 = arith.constant 2.000000e+00 : f32
    %11 = vector.broadcast %cst_3 : f32 to vector<16x32xf32>
    %12 = arith.mulf %11, %1 : vector<16x32xf32>
    %13 = arith.mulf %12, %9 : vector<16x32xf32>
    %14 = arith.subf %13, %1 : vector<16x32xf32>
    %15 = arith.truncf %14 : vector<16x32xf32> to vector<16x32xbf16>
    %cst_4 = arith.constant 2.000000e+00 : f32
    %16 = vector.broadcast %cst_4 : f32 to vector<16x32xf32>
    %17 = arith.mulf %16, %1 : vector<16x32xf32>
    %18 = arith.mulf %17, %14 : vector<16x32xf32>
    %19 = arith.subf %18, %9 : vector<16x32xf32>
    %20 = arith.truncf %19 : vector<16x32xf32> to vector<16x32xbf16>
    %cst_5 = arith.constant 0.000000e+00 : bf16
    %21 = vector.broadcast %cst_5 : bf16 to vector<16x96xbf16>
    %22 = tpu.concatenate %3, %5, %10, %15, %20, %21 in 1 : vector<16x32xbf16>, vector<16x32xbf16>, vector<16x32xbf16>, vector<16x32xbf16>, vector<16x32xbf16>, vector<16x96xbf16> -> vector<16x256xbf16>
    %c0_6 = arith.constant 0 : index
    %c0_7 = arith.constant 0 : index
    %23 = vector.load %arg2[%c0_6, %c0_7] : memref<256x128xbf16, #tpu.memory_space<vmem>>, vector<256x128xbf16>
    %cst_8 = arith.constant dense<0.000000e+00> : vector<16x128xf32>
    %24 = tpu.matmul %22, %23, %cst_8 {dimension_numbers = #tpu.dot_dimension_numbers<[1], [0], [0], [1], [0, 0, 1, 1], [], []>} : vector<16x256xbf16>, vector<256x128xbf16>, vector<16x128xf32> -> vector<16x128xf32>
    %c0_9 = arith.constant 0 : index
    %c0_10 = arith.constant 0 : index
    %25 = vector.load %arg3[%c0_9, %c0_10] : memref<16x128xf32, #tpu.memory_space<vmem>>, vector<16x128xf32>
    tpu.vector_store %arg3[%c0_9, %c0_10], %24 {strides = array<i32>} : memref<16x128xf32, #tpu.memory_space<vmem>>, vector<16x128xf32>,
    return
  }
  func.func @transform_0(%arg0: i32) -> (i32, i32) {
    %c0_i32 = arith.constant 0 : i32
    %c0_i32_0 = arith.constant 0 : i32
    return %arg0, %c0_i32 : i32, i32
  }
  func.func @transform_1(%arg0: i32) -> (i32, i32) {
    %c0_i32 = arith.constant 0 : i32
    %c0_i32_0 = arith.constant 0 : i32
    %c0_i32_1 = arith.constant 0 : i32
    return %c0_i32, %c0_i32_0 : i32, i32
  }
  func.func @transform_2(%arg0: i32) -> (i32, i32) {
    %c0_i32 = arith.constant 0 : i32
    %c0_i32_0 = arith.constant 0 : i32
    return %arg0, %c0_i32 : i32, i32
  }
}

</mosaic_0001>

<bundles_post_ra>
// kernel: tpu_custom_call.1
= control target key start
LH: loop header
LB: loop body
LE: loop exit
PB: predicated region body
PF: predicated region fallthrough
CT: control target
= control target key end

     0   :  { %7 = vsyncpa [#allocation3], 0  ;;  %s488_s0 = inlined_call_operand.hbm [shape: f32[16,32], index: 0, kind: input, shape index: {}]   ;;  %s489_s1 = inlined_call_operand.hbm [shape: bf16[256,128], index: 1, kind: input, shape index: {}]   ;;  %s490_s2 = inlined_call_operand.hbm [shape: f32[16,128], index: 2, kind: output, shape index: {}]  }
   0x1   :  { %8 = vsyncpa [#allocation6], 0 }
   0x2   :  { %9 = vsyncpa [#allocation4], 0  ;;  %s419_s9 = smov [#allocation2]   ;;  %s347_s13 = scalar_lea.hbm %s488_s0, 256 }
   0x3   :  { %s15_s10 = sshll.u32 %s419_s9, 4  ;;  %p348_p0 = scmp.ne.s32.totalorder %s488_s0, %s347_s13  ;;  %s16_s10 = int_to_ptr.vmem [resolvable:$true] %s15_s10 }
   0x4   :  { %p351_p1 = scmp.lt.u32.totalorder %s347_s13, %s488_s0 }
   0x6   :  { %p353_p2 = pnand %p351_p1, %p348_p0 }
   0x8   :  { %356 = shalt.err (!%p353_p2)
}
   0x9   :  { %s357_s18 = scalar_lea.vmem %s16_s10, 256  ;;  %p362_p4 = scmp.lt.s32.totalorder %s16_s10, %s16_s10 }
   0xa   :  { %p358_p3 = scmp.ne.s32.totalorder %s16_s10, %s357_s18  ;;  %p363_p5 = scmp.lt.s32.totalorder %s357_s18, %s357_s18 }
   0xc   :  { %p364_p6 = por %p363_p5, %p362_p4 }
   0xe   :  { %p365_p7 = pnand %p364_p6, %p358_p3 }
  0x10   :  { %368 = shalt.err (!%p365_p7)
}
  0x11   :  { %s420_s19 = smov 128   ;;  %s421_s20 = smov 8  }
  0x12   :  { %21 = dma.hbm_to_vmem [thread:$0]  %s488_s0, 256, %s16_s10, [#allocation3], %s420_s19, %s420_s19, %s421_s20  }
  0x13   :  { %s422_s23 = smov [#allocation5]   ;;  %s369_s27 = scalar_lea.hbm %s489_s1, 2048 }
  0x14   :  { %s27_s24 = sshll.u32 %s422_s23, 4  ;;  %p370_p8 = scmp.ne.s32.totalorder %s489_s1, %s369_s27  ;;  %s28_s24 = int_to_ptr.vmem [resolvable:$true] %s27_s24 }
  0x15   :  { %p373_p9 = scmp.lt.u32.totalorder %s369_s27, %s489_s1 }
  0x17   :  { %p375_p10 = pnand %p373_p9, %p370_p8 }
  0x19   :  { %378 = shalt.err (!%p375_p10)
}
  0x1a   :  { %s379_s4 = scalar_lea.vmem %s28_s24, 2048  ;;  %p384_p12 = scmp.lt.s32.totalorder %s28_s24, %s28_s24 }
  0x1b   :  { %p380_p11 = scmp.ne.s32.totalorder %s28_s24, %s379_s4  ;;  %p385_p13 = scmp.lt.s32.totalorder %s379_s4, %s379_s4 }
  0x1d   :  { %p386_p0 = por %p385_p13, %p384_p12 }
  0x1f   :  { %p387_p1 = pnand %p386_p0, %p380_p11 }
  0x21   :  { %390 = shalt.err (!%p387_p1)
}
  0x22   :  { %s423_s0 = smov 64   ;;  %s424_s5 = smov 4  }
  0x23   :  { %33 = dma.hbm_to_vmem [thread:$0]  %s489_s1, 2048, %s28_s24, [#allocation6], %s423_s0, %s423_s0, %s424_s5  }
  0x24   :  { %413 = dma.done.wait [#allocation3], 256  }
  0x25   :  { %414 = vsyncadd [#allocation3], 4294967040 }
  0x26   :  { %415 = dma.done.wait [#allocation6], 2048  }
  0x27   :  { %416 = vsyncadd [#allocation6], 4294965248  ;;  %v42_v0 = vld [vmem:[#allocation2] sm:$0xff]  ;;  %v43_v1 = vld [vmem:[#allocation2 + $0x8] sm:$0xff]  ;;  %s425_s1 = smov 32   ;;  %s426_s8 = smov 96  }
  0x28   :  { %343 = vtanh.f32 %v42_v0  ;;  %v327_v2 = vld [vmem:[#allocation5 + $0x40] sm:$0xff]   ;;  %v329_v4 = vld [vmem:[#allocation5 + $0x48] sm:$0xff]   ;;  %v331_v6 = vld [vmem:[#allocation5 + $0x50] sm:$0xff]   ;;  %vm73_vm0 = vcmask 261120   ;;  %vm77_vm1 = vcmask 523264   ;;  %vm80_vm2 = vcmask 785408  }
  0x29   :  { %345 = vtanh.f32 %v43_v1  ;;  %v328_v3 = vld [vmem:[#allocation5] sm:$0xff]   ;;  %296 = vmatprep.subr.bf16.mxu0 %v327_v2  ;;  %v330_v5 = vld [vmem:[#allocation5 + $0x8] sm:$0xff]   ;;  %v332_v7 = vld [vmem:[#allocation5 + $0x10] sm:$0xff]   ;;  %s427_s9 = smov [#allocation7]  }
  0x2a   :  { %297 = vmatpush3.bf16.msra.mxu0 %v328_v3  ;;  %v333_v8 = vld [vmem:[#allocation5 + $0x58] sm:$0xff]   ;;  %v335_v15 = vld [vmem:[#allocation5 + $0x60] sm:$0xff]   ;;  %v337_v21 = vld [vmem:[#allocation5 + $0x68] sm:$0xff]   ;;  %s264_s10 = sshll.u32 %s427_s9, 4  ;;  %s265_s10 = int_to_ptr.vmem [resolvable:$true] %s264_s10 }
  0x2b   :  { %298 = vmatprep.subr.bf16.mxu0 %v329_v4  ;;  %v334_v12 = vld [vmem:[#allocation5 + $0x18] sm:$0xff]   ;;  %v336_v19 = vld [vmem:[#allocation5 + $0x20] sm:$0xff]   ;;  %v338_v26 = vld [vmem:[#allocation5 + $0x28] sm:$0xff]   ;;  %s391_s11 = scalar_lea.vmem %s265_s10, 256  ;;  %p396_p3 = scmp.lt.s32.totalorder %s265_s10, %s265_s10 }
  0x2c   :  { %v339_v28 = vld [vmem:[#allocation5 + $0x70] sm:$0xff]   ;;  %v341_v34 = vld [vmem:[#allocation5 + $0x78] sm:$0xff]   ;;  %p392_p2 = scmp.ne.s32.totalorder %s265_s10, %s391_s11  ;;  %p397_p4 = scmp.lt.s32.totalorder %s391_s11, %s391_s11 }
  0x2d   :  { %v340_v32 = vld [vmem:[#allocation5 + $0x30] sm:$0xff]   ;;  %v342_v37 = vld [vmem:[#allocation5 + $0x38] sm:$0xff]  }
  0x2e   :  { %299 = vmatpush3.bf16.msra.mxu0 %v330_v5  ;;  %p398_p5 = por %p397_p4, %p396_p3 }
  0x2f   :  { %300 = vmatprep.subr.bf16.mxu0 %v331_v6 }
  0x30   :  { %p399_p6 = pnand %p398_p5, %p392_p2 }
  0x32   :  { %v344_v9 = vpop.eup %343  ;;  %301 = vmatpush3.bf16.msra.mxu0 %v332_v7 }
  0x33   :  { %v346_v10 = vpop.eup %345  ;;  %v47_v11 = vmul.f32 2.0, %v344_v9  ;;  %302 = vmatprep.subr.bf16.mxu0 %v333_v8 }
  0x34   :  { %v46_v13 = vpack.c.bf16 %v346_v10, %v344_v9  ;;  %v48_v14 = vmul.f32 2.0, %v346_v10 }
  0x35   :  { %v49_v16 = vmul.f32 %v344_v9, %v47_v11 }
  0x36   :  { %65 = vrot.lane.b32.xlu0 %v46_v13, %s425_s1  ;;  %v50_v17 = vmul.f32 %v346_v10, %v48_v14  ;;  %303 = vmatpush3.bf16.msra.mxu0 %v334_v12 }
  0x37   :  { %v277_v18 = vadd.f32 -1.0, %v49_v16  ;;  %304 = vmatprep.subr.bf16.mxu0 %v335_v15 }
  0x38   :  { %v278_v20 = vadd.f32 -1.0, %v50_v17 }
  0x39   :  { %v54_v22 = vmul.f32 %v277_v18, %v47_v11 }
  0x3a   :  { %v53_v23 = vpack.c.bf16 %v278_v20, %v277_v18  ;;  %v55_v24 = vmul.f32 %v278_v20, %v48_v14  ;;  %305 = vmatpush3.bf16.msra.mxu0 %v336_v19 }
  0x3b   :  { %v56_v25 = vsub.f32 %v54_v22, %v344_v9  ;;  %306 = vmatprep.subr.bf16.mxu0 %v337_v21 }
  0x3c   :  { %68 = vrot.lane.b32.xlu0 %v53_v23, %s423_s0  ;;  %v57_v27 = vsub.f32 %v55_v24, %v346_v10 }
  0x3d   :  { %v59_v29 = vmul.f32 %v56_v25, %v47_v11 }
  0x3e   :  { %v58_v30 = vpack.c.bf16 %v57_v27, %v56_v25  ;;  %v60_v31 = vmul.f32 %v57_v27, %v48_v14  ;;  %307 = vmatpush3.bf16.msra.mxu0 %v338_v26 }
  0x3f   :  { %v61_v33 = vsub.f32 %v59_v29, %v277_v18  ;;  %308 = vmatprep.subr.bf16.mxu0 %v339_v28 }
  0x40   :  { %71 = vrot.lane.b32.xlu1 %v58_v30, %s426_s8  ;;  %v62_v35 = vsub.f32 %v60_v31, %v278_v20 }
  0x42   :  { %v63_v36 = vpack.c.bf16 %v62_v35, %v61_v33  ;;  %309 = vmatpush3.bf16.msra.mxu0 %v340_v32 }
  0x43   :  { %310 = vmatprep.subr.bf16.mxu0 %v341_v34 }
  0x44   :  { %295 = vmatprep.mubr.msk.bf16.mxu0 %vm73_vm0, %v63_v36 }
  0x46   :  { %311 = vmatpush3.bf16.msra.mxu0 %v342_v37 }
  0xa8   :  { %v66_v38 = vpop.permute.xlu0 %65 }
  0xa9   :  { %v76_v39 = vsel %vm73_vm0, 1065369472, %v66_v38 }
  0xae   :  { %v69_v40 = vpop.permute.xlu0 %68 }
  0xaf   :  { %v79_v41 = vsel %vm77_vm1, %v76_v39, %v69_v40 }
  0xb2   :  { %v72_v42 = vpop.permute.xlu1 %71 }
  0xb3   :  { %v82_v43 = vsel %vm80_vm2, %v79_v41, %v72_v42 }
  0xb4   :  { %249 = vmatmul.mubr.bf16.vlgmr.msra.gmra.mrb[0].mxu0 %v82_v43 }
 0x187   :  { %v312_v44 = vpop.f32.mrb[0].mxu0 }
 0x188   :  { %v313_v45 = vpop.f32.mrb[1].mxu0 }
 0x189   :  { %v314_v46 = vadd.f32 %v313_v45, %v312_v44  ;;  %v315_v47 = vpop.f32.mrb[2].mxu0 }
 0x18a   :  { %v316_v48 = vpop.f32.mrb[3].mxu0 }
 0x18b   :  { %257 = vst [vmem:[#allocation7] sm:$0xff] %v314_v46  ;;  %v317_v49 = vadd.f32 %v316_v48, %v315_v47 }
 0x18d   :  { %258 = vst [vmem:[#allocation7 + $0x8] sm:$0xff] %v317_v49 }
 0x18e   :  { %402 = shalt.err (!%p399_p6)
}
 0x18f   :  { %s403_s14 = scalar_lea.hbm %s490_s2, 256 }
 0x190   :  { %p404_p7 = scmp.ne.s32.totalorder %s490_s2, %s403_s14  ;;  %p407_p8 = scmp.lt.u32.totalorder %s403_s14, %s490_s2 }
 0x192   :  { %p409_p9 = pnand %p407_p8, %p404_p7 }
 0x194   :  { %412 = shalt.err (!%p409_p9)
}
 0x195   :  { %270 = dma.vmem_to_hbm [thread:$0]  %s265_s10, 256, %s490_s2, [#allocation4], %s420_s19, %s420_s19, %s421_s20  }
 0x196   :  { %417 = dma.done.wait [#allocation4], 256  }
 0x197   :  { %418 = vsyncadd [#allocation4], 4294967040 }
 0x198   :  { %274 = vsyncpa [#allocation3], 1 }
 0x199   :  { %275 = vsyncpa [#allocation6], 1 }
 0x19a   :  { %276 = vsyncpa [#allocation4], 1 }

</bundles_post_ra>
